<compile_context>
chip_gen: v7x
topology: tpu7x:2x2x1
jax: 0.10.0
libtpu: 0.0.40
codegen_flags: <defaults>
</compile_context>

<pallas_src>
import functools

import numpy as np
import jax
import jax.numpy as jnp
from jax import lax
from jax.experimental import pallas as pl
from jax.experimental.pallas import tpu as pltpu

NUM_INPUT = 15
NUM_HIDDEN = 100
NUM_OUTPUT = 4
FFT_FEAT = NUM_INPUT // 2 + 1          # 8
HIDDEN_PAD = 128                       # hidden zero-padded to 128


def _round_up(a, m):
    return (a + m - 1) // m * m


def fan_kernel(x_ref, basis_ref, w1_ref, b1_ref, w2_ref, b2_ref, out_ref,
               *, chunk_cols, num_chunks, unroll):
    # Feature-major (lane-dense): batch on the 128-lane axis.
    #   x_ref : (15, TB)   basis_ref : (16, 15)  rows = [cos ; -sin]
    #   w1_ref: (128, 8)   b1_ref    : (128, 1)
    #   w2_ref: (4, 128)   b2_ref    : (4, 1)
    #   out_ref: (4, TB)
    basis = basis_ref[...]
    w1 = w1_ref[...]
    w2 = w2_ref[...]

    # Hoist bias broadcasts out of the (partially unrolled) chunk loop — JAX does
    # not CSE broadcast_in_dim, so doing this per chunk re-materializes it.
    b1_b = jnp.broadcast_to(b1_ref[...], (HIDDEN_PAD, chunk_cols))
    b2_b = jnp.broadcast_to(b2_ref[...], (NUM_OUTPUT, chunk_cols))

    def body(c, carry):
        col = pl.multiple_of(c * chunk_cols, chunk_cols)
        x = x_ref[:, pl.ds(col, chunk_cols)]                                 # (15, C)

        # Fused real DFT: one matmul stacks [Re ; Im] of rfft(x) on sublanes.
        y = jnp.dot(basis, x, preferred_element_type=jnp.float32)            # (16, C)
        y2 = y * y
        mag = jnp.sqrt(y2[:FFT_FEAT, :] + y2[FFT_FEAT:, :])                  # |rfft| (8, C)

        # fc1 (hidden zero-padded 100 -> 128) + ReLU
        h = jnp.maximum(
            jnp.dot(w1, mag, preferred_element_type=jnp.float32) + b1_b, 0.0)  # (128, C)

        # TODO(synk): dropout is identity at inference; training-mode masking
        # (pltpu.prng_*) intentionally not implemented.

        # fc2 — lane-dense (4, C) store.
        out = jnp.dot(w2, h, preferred_element_type=jnp.float32) + b2_b      # (4, C)
        out_ref[:, pl.ds(col, chunk_cols)] = out.astype(out_ref.dtype)
        return carry

    lax.fori_loop(0, num_chunks, body, 0, unroll=unroll)


def fourier_analysis_network(x, params, *, block_cols=16384, chunk_cols=128):
    """x: (B, 15) float32 -> (B, 4) float32."""
    basis, w1, b1, w2, b2 = params
    x = x.astype(jnp.float32)
    B = x.shape[0]

    # Lane-dense layout: wrapper transpose puts the batch on the lane axis
    # (layout plumbing; the (4, B) output transpose back is negligible).
    xT = x.T                                                   # (15, B)

    block_cols = _round_up(block_cols, chunk_cols)
    tb = min(block_cols, _round_up(max(B, 1), chunk_cols))     # batch tile (lanes)
    grid = (pl.cdiv(B, tb),)                                   # ragged last block: Pallas clips
    num_chunks = tb // chunk_cols
    unroll = max(1, min(4, num_chunks))                        # cap unroll (no bundle blowup)

    flops = 2 * B * (2 * FFT_FEAT * NUM_INPUT
                     + HIDDEN_PAD * FFT_FEAT
                     + NUM_OUTPUT * HIDDEN_PAD)
    bytes_accessed = (B * (NUM_INPUT + NUM_OUTPUT) * 4
                      + sum(int(np.prod(p.shape)) * 4 for p in params))

    kernel = functools.partial(fan_kernel, chunk_cols=chunk_cols,
                               num_chunks=num_chunks, unroll=unroll)
    const = lambda i: (0, 0)

    outT = pl.pallas_call(
        kernel,
        out_shape=jax.ShapeDtypeStruct((NUM_OUTPUT, B), jnp.float32),
        grid_spec=pltpu.PrefetchScalarGridSpec(
            num_scalar_prefetch=0,
            grid=grid,
            in_specs=[
                pl.BlockSpec((NUM_INPUT, tb), lambda i: (0, i)),       # x (streamed)
                pl.BlockSpec((2 * FFT_FEAT, NUM_INPUT), const),        # DFT basis (resident)
                pl.BlockSpec((HIDDEN_PAD, FFT_FEAT), const),           # w1
                pl.BlockSpec((HIDDEN_PAD, 1), const),                  # b1
                pl.BlockSpec((NUM_OUTPUT, HIDDEN_PAD), const),         # w2
                pl.BlockSpec((NUM_OUTPUT, 1), const),                  # b2
            ],
            out_specs=pl.BlockSpec((NUM_OUTPUT, tb), lambda i: (0, i)),
        ),
        compiler_params=pltpu.CompilerParams(
            dimension_semantics=("parallel",),    # megacore on v7x; no-op on v5e/v6e
        ),
        cost_estimate=pl.CostEstimate(
            flops=flops,
            transcendentals=B * FFT_FEAT,         # sqrt per rfft bin
            bytes_accessed=bytes_accessed,
        ),
    )(xT, basis, w1, b1, w2, b2)

    return outT.T                                 # (B, 4)


def make_params():
    """Deterministic parameter init (PyTorch nn.Linear-style uniform ranges),
    stored feature-major (out, in) so the kernel uses them without transposes."""
    key = jax.random.PRNGKey(16981)
    k1, k2, k3, k4 = jax.random.split(key, 4)

    # Fused rfft basis: rows [0:8] = cos, rows [8:16] = -sin, so
    # basis @ x^T = [Re(rfft(x)); Im(rfft(x))]; the sin sign cancels in |.|.
    n = np.arange(NUM_INPUT)[None, :]
    k = np.arange(FFT_FEAT)[:, None]
    ang = 2.0 * np.pi * n * k / NUM_INPUT
    basis = jnp.asarray(np.concatenate([np.cos(ang), -np.sin(ang)], axis=0),
                        dtype=jnp.float32)                                  # (16, 15)

    bound1 = 1.0 / np.sqrt(FFT_FEAT)
    w1 = jax.random.uniform(k1, (NUM_HIDDEN, FFT_FEAT), jnp.float32, -bound1, bound1)
    b1 = jax.random.uniform(k2, (NUM_HIDDEN, 1), jnp.float32, -bound1, bound1)

    bound2 = 1.0 / np.sqrt(NUM_HIDDEN)
    w2 = jax.random.uniform(k3, (NUM_OUTPUT, NUM_HIDDEN), jnp.float32, -bound2, bound2)
    b2 = jax.random.uniform(k4, (NUM_OUTPUT, 1), jnp.float32, -bound2, bound2)

    # Zero-pad hidden 100 -> 128; padded fc1 rows / fc2 cols are zero => math unchanged.
    w1_p = jnp.pad(w1, ((0, HIDDEN_PAD - NUM_HIDDEN), (0, 0)))   # (128, 8)
    b1_p = jnp.pad(b1, ((0, HIDDEN_PAD - NUM_HIDDEN), (0, 0)))   # (128, 1)
    w2_p = jnp.pad(w2, ((0, 0), (0, HIDDEN_PAD - NUM_HIDDEN)))   # (4, 128)

    return basis, w1_p, b1_p, w2_p, b2


def reference(x, params):
    """Pure-JAX reference for correctness checking."""
    _, w1, b1, w2, b2 = params
    fft_features = jnp.abs(jnp.fft.rfft(x, axis=-1))                         # (B, 8)
    h = jnp.maximum(fft_features @ w1[:NUM_HIDDEN, :].T + b1[:NUM_HIDDEN, 0], 0.0)
    return h @ w2[:, :NUM_HIDDEN].T + b2[:, 0]


if __name__ == "__main__":
    params = make_params()

    # Small deterministic input, batch=2 (module: features = 15).
    x_small = jax.random.normal(jax.random.PRNGKey(0), (2, NUM_INPUT), dtype=jnp.float32)
    out_small = jax.block_until_ready(fourier_analysis_network(x_small, params))
    np.testing.assert_allclose(np.asarray(out_small),
                               np.asarray(reference(x_small, params)),
                               rtol=2e-4, atol=2e-4)

    # Also exercise the ragged-batch + multi-chunk path (still small).
    x_big = jax.random.normal(jax.random.PRNGKey(1), (600, NUM_INPUT), dtype=jnp.float32)
    out_big = jax.block_until_ready(fourier_analysis_network(x_big, params))
    np.testing.assert_allclose(np.asarray(out_big),
                               np.asarray(reference(x_big, params)),
                               rtol=2e-4, atol=2e-4)

    print("KERNEL_OK")
</pallas_src>

<mosaic_0001>
module attributes {stable_mosaic.version = 11 : i64} {
  func.func @fan_kernel(%arg0: i32, %arg1: memref<15x128xf32, #tpu.memory_space<vmem>>, %arg2: memref<16x15xf32, #tpu.memory_space<vmem>>, %arg3: memref<128x8xf32, #tpu.memory_space<vmem>>, %arg4: memref<128x1xf32, #tpu.memory_space<vmem>>, %arg5: memref<4x128xf32, #tpu.memory_space<vmem>>, %arg6: memref<4x1xf32, #tpu.memory_space<vmem>>, %arg7: memref<4x128xf32, #tpu.memory_space<vmem>>) attributes {dimension_semantics = [#tpu.dimension_semantics<parallel>], iteration_bounds = array<i64: 1>, scalar_prefetch = 0 : i64, scratch_operands = 0 : i64, tpu.core_type = #tpu.core_type<tc>, window_params = [{transform_indices = @transform_0, window_bounds = array<i64: 15, 128>}, {pipeline_mode = #tpu.pipeline_mode<synchronous>, transform_indices = @transform_1, window_bounds = array<i64: 16, 15>}, {pipeline_mode = #tpu.pipeline_mode<synchronous>, transform_indices = @transform_2, window_bounds = array<i64: 128, 8>}, {pipeline_mode = #tpu.pipeline_mode<synchronous>, transform_indices = @transform_3, window_bounds = array<i64: 128, 1>}, {pipeline_mode = #tpu.pipeline_mode<synchronous>, transform_indices = @transform_4, window_bounds = array<i64: 4, 128>}, {pipeline_mode = #tpu.pipeline_mode<synchronous>, transform_indices = @transform_5, window_bounds = array<i64: 4, 1>}, {transform_indices = @transform_6, window_bounds = array<i64: 4, 128>}]} {
    %c0 = arith.constant 0 : index
    %c0_0 = arith.constant 0 : index
    %0 = vector.load %arg2[%c0, %c0_0] : memref<16x15xf32, #tpu.memory_space<vmem>>, vector<16x15xf32>
    %c0_1 = arith.constant 0 : index
    %c0_2 = arith.constant 0 : index
    %1 = vector.load %arg3[%c0_1, %c0_2] : memref<128x8xf32, #tpu.memory_space<vmem>>, vector<128x8xf32>
    %c0_3 = arith.constant 0 : index
    %c0_4 = arith.constant 0 : index
    %2 = vector.load %arg5[%c0_3, %c0_4] : memref<4x128xf32, #tpu.memory_space<vmem>>, vector<4x128xf32>
    %c0_5 = arith.constant 0 : index
    %c0_6 = arith.constant 0 : index
    %3 = vector.load %arg4[%c0_5, %c0_6] : memref<128x1xf32, #tpu.memory_space<vmem>>, vector<128x1xf32>
    %4 = vector.shape_cast %3 : vector<128x1xf32> to vector<128x1xf32>
    %5 = vector.broadcast %4 : vector<128x1xf32> to vector<128x128xf32>
    %c0_7 = arith.constant 0 : index
    %c0_8 = arith.constant 0 : index
    %6 = vector.load %arg6[%c0_7, %c0_8] : memref<4x1xf32, #tpu.memory_space<vmem>>, vector<4x1xf32>
    %7 = vector.shape_cast %6 : vector<4x1xf32> to vector<4x1xf32>
    %8 = vector.broadcast %7 : vector<4x1xf32> to vector<4x128xf32>
    %c0_i32 = arith.constant 0 : i32
    %c128_i32 = arith.constant 128 : i32
    %9 = arith.muli %c0_i32, %c128_i32 : i32
    %10 = tpu.assume_multiple %9, 128 : i32
    %c0_9 = arith.constant 0 : index
    %11 = arith.index_cast %10 : i32 to index
    %12 = vector.load %arg1[%c0_9, %11] : memref<15x128xf32, #tpu.memory_space<vmem>>, vector<15x128xf32>
    %cst = arith.constant dense<0.000000e+00> : vector<16x128xf32>
    %13 = tpu.matmul %0, %12, %cst {dimension_numbers = #tpu.dot_dimension_numbers<[1], [0], [0], [1], [0, 0, 1, 1], [], []>} : vector<16x15xf32>, vector<15x128xf32>, vector<16x128xf32> -> vector<16x128xf32>
    %14 = arith.mulf %13, %13 : vector<16x128xf32>
    %15 = vector.extract_strided_slice %14 {offsets = [0, 0], sizes = [8, 128], strides = [1, 1]} : vector<16x128xf32> to vector<8x128xf32>
    %16 = vector.extract_strided_slice %14 {offsets = [8, 0], sizes = [8, 128], strides = [1, 1]} : vector<16x128xf32> to vector<8x128xf32>
    %17 = arith.addf %15, %16 : vector<8x128xf32>
    %18 = math.sqrt %17 : vector<8x128xf32>
    %cst_10 = arith.constant dense<0.000000e+00> : vector<128x128xf32>
    %19 = tpu.matmul %1, %18, %cst_10 {dimension_numbers = #tpu.dot_dimension_numbers<[1], [0], [0], [1], [0, 0, 1, 1], [], []>} : vector<128x8xf32>, vector<8x128xf32>, vector<128x128xf32> -> vector<128x128xf32>
    %20 = arith.addf %19, %5 : vector<128x128xf32>
    %cst_11 = arith.constant 0.000000e+00 : f32
    %21 = vector.broadcast %cst_11 : f32 to vector<128x128xf32>
    %22 = arith.maximumf %20, %21 : vector<128x128xf32>
    %cst_12 = arith.constant dense<0.000000e+00> : vector<4x128xf32>
    %23 = tpu.matmul %2, %22, %cst_12 {dimension_numbers = #tpu.dot_dimension_numbers<[1], [0], [0], [1], [0, 0, 1, 1], [], []>} : vector<4x128xf32>, vector<128x128xf32>, vector<4x128xf32> -> vector<4x128xf32>
    %24 = arith.addf %23, %8 : vector<4x128xf32>
    %c0_13 = arith.constant 0 : index
    %25 = arith.index_cast %10 : i32 to index
    %26 = vector.load %arg7[%c0_13, %25] : memref<4x128xf32, #tpu.memory_space<vmem>>, vector<4x128xf32>
    tpu.vector_store %arg7[%c0_13, %25], %24 {strides = array<i32>} : memref<4x128xf32, #tpu.memory_space<vmem>>, vector<4x128xf32>,
    %c1_i32 = arith.constant 1 : i32
    return
  }
  func.func @transform_0(%arg0: i32) -> (i32, i32) {
    %c0_i32 = arith.constant 0 : i32
    %c0_i32_0 = arith.constant 0 : i32
    return %c0_i32, %arg0 : i32, i32
  }
  func.func @transform_1(%arg0: i32) -> (i32, i32) {
    %c0_i32 = arith.constant 0 : i32
    %c0_i32_0 = arith.constant 0 : i32
    %c0_i32_1 = arith.constant 0 : i32
    return %c0_i32, %c0_i32_0 : i32, i32
  }
  func.func @transform_2(%arg0: i32) -> (i32, i32) {
    %c0_i32 = arith.constant 0 : i32
    %c0_i32_0 = arith.constant 0 : i32
    %c0_i32_1 = arith.constant 0 : i32
    return %c0_i32, %c0_i32_0 : i32, i32
  }
  func.func @transform_3(%arg0: i32) -> (i32, i32) {
    %c0_i32 = arith.constant 0 : i32
    %c0_i32_0 = arith.constant 0 : i32
    %c0_i32_1 = arith.constant 0 : i32
    return %c0_i32, %c0_i32_0 : i32, i32
  }
  func.func @transform_4(%arg0: i32) -> (i32, i32) {
    %c0_i32 = arith.constant 0 : i32
    %c0_i32_0 = arith.constant 0 : i32
    %c0_i32_1 = arith.constant 0 : i32
    return %c0_i32, %c0_i32_0 : i32, i32
  }
  func.func @transform_5(%arg0: i32) -> (i32, i32) {
    %c0_i32 = arith.constant 0 : i32
    %c0_i32_0 = arith.constant 0 : i32
    %c0_i32_1 = arith.constant 0 : i32
    return %c0_i32, %c0_i32_0 : i32, i32
  }
  func.func @transform_6(%arg0: i32) -> (i32, i32) {
    %c0_i32 = arith.constant 0 : i32
    %c0_i32_0 = arith.constant 0 : i32
    return %c0_i32, %arg0 : i32, i32
  }
}

</mosaic_0001>

<bundles_post_ra>
// kernel: tpu_custom_call.1
= control target key start
LH: loop header
LB: loop body
LE: loop exit
PB: predicated region body
PF: predicated region fallthrough
CT: control target
= control target key end

     0   :  { %vm153_vm0 = vcmask 1046528   ;;  %vm146_vm1 = vcmask 121856   ;;  %vm691_vm2 = vmmov 1   ;;  %vm242_vm4 = vcmask 64512   ;;  %s872_s0 = inlined_call_operand.vmem [shape: f32[15,2], index: 0, kind: input, shape index: {}]   ;;  %s873_s1 = inlined_call_operand.vmem [shape: f32[16,15], index: 1, kind: input, shape index: {}]   ;;  %s874_s2 = inlined_call_operand.vmem [shape: f32[128,8], index: 2, kind: input, shape index: {}]   ;;  %s875_s3 = inlined_call_operand.vmem [shape: f32[128,1], index: 3, kind: input, shape index: {}]   ;;  %s876_s5 = inlined_call_operand.vmem [shape: f32[4,1], index: 5, kind: input, shape index: {}]   ;;  %s877_s4 = inlined_call_operand.vmem [shape: f32[4,128], index: 4, kind: input, shape index: {}]   ;;  %s878_s6 = inlined_call_operand.vmem [shape: f32[4,2], index: 6, kind: output, shape index: {}]  }
   0x1   :  { %v144_v0 = vld [vmem:[%s872_s0] sm:$0xff]  ;;  %v145_v1 = vld [vmem:[%s872_s0 + $0x8] sm:$0x7f]  ;;  %vm653_vm3 = vmpackc.low %vm153_vm0, %vm691_vm2  ;;  %v692_v6 = vmov 0   ;;  %v693_v49 = vmov 0.0|0.0   ;;  %vm694_vm7 = vmmov 0  }
   0x2   :  { %v652_v2 = vpack.c.bf16 %v145_v1, %v144_v0  ;;  %v23_v3 = vld [vmem:[%s873_s1] sm:$0xff]  ;;  %v24_v4 = vld [vmem:[%s873_s1 + $0x8] sm:$0xff]  ;;  %687 = vset.pattern.permute.xlu0 %v692_v6  ;;  %688 = vset.pattern.permute.xlu1 %v692_v6  ;;  %v44_v8 = vld [vmem:[%s875_s3 + $0x10] sm:$0xff]  ;;  %v695_v50 = vmov 0.0  }
   0x3   :  { %588 = vmatprep.mubr.msk.f32.mxu0 %vm146_vm1, %v23_v3  ;;  %v25_v5 = vld [vmem:[%s874_s2] sm:$0xff]  ;;  %70 = vperm.xlu1 %688, %v44_v8   ;;  %v43_v9 = vld [vmem:[%s875_s3 + $0x8] sm:$0xff]  ;;  %v45_v10 = vld [vmem:[%s875_s3 + $0x18] sm:$0xff] }
   0x4   :  { %654 = vmatprep.subr.msk.bf16.mxu0 %vm653_vm3, %v652_v2  ;;  %593 = vmatprep.mubr.msk.f32.mxu1 %vm242_vm4, %v25_v5  ;;  %v42_v7 = vld [vmem:[%s875_s3] sm:$0xff]  ;;  %v47_v12 = vld [vmem:[%s875_s3 + $0x28] sm:$0xff]  ;;  %v48_v13 = vld [vmem:[%s875_s3 + $0x30] sm:$0xff] }
   0x5   :  { %657 = vmatpush3.bf16.msk.msra.mxu0 %vm653_vm3, %v652_v2  ;;  %60 = vperm.xlu0 %687, %v42_v7   ;;  %v46_v11 = vld [vmem:[%s875_s3 + $0x20] sm:$0xff]  ;;  %v49_v14 = vld [vmem:[%s875_s3 + $0x38] sm:$0xff]  ;;  %v51_v16 = vld [vmem:[%s875_s3 + $0x48] sm:$0xff] }
   0x6   :  { %v50_v15 = vld [vmem:[%s875_s3 + $0x40] sm:$0xff]  ;;  %v52_v17 = vld [vmem:[%s875_s3 + $0x50] sm:$0xff]  ;;  %v53_v18 = vld [vmem:[%s875_s3 + $0x58] sm:$0xff] }
   0x7   :  { %75 = vperm.xlu1 %688, %v45_v10   ;;  %v54_v19 = vld [vmem:[%s875_s3 + $0x60] sm:$0xff]  ;;  %v55_v20 = vld [vmem:[%s875_s3 + $0x68] sm:$0xff]  ;;  %v56_v21 = vld [vmem:[%s875_s3 + $0x70] sm:$0xff] }
   0x8   :  { %589 = vmatmul.mubr.msk.f32.vlgmr.msra.gmra.mrb[0].mxu0 %vm146_vm1, %v24_v4  ;;  %v57_v22 = vld [vmem:[%s875_s3 + $0x78] sm:$0xff]  ;;  %v138_v23 = vld [vmem:[%s876_s5] sm:$0xf]  ;;  %v26_v34 = vld [vmem:[%s874_s2 + $0x8] sm:$0xff] }
   0x9   :  { %65 = vperm.xlu0 %687, %v43_v9   ;;  %v27_v35 = vld [vmem:[%s874_s2 + $0x10] sm:$0xff]  ;;  %v28_v36 = vld [vmem:[%s874_s2 + $0x18] sm:$0xff]  ;;  %v29_v37 = vld [vmem:[%s874_s2 + $0x20] sm:$0xff] }
   0xa   :  { %v30_v38 = vld [vmem:[%s874_s2 + $0x28] sm:$0xff]  ;;  %v31_v39 = vld [vmem:[%s874_s2 + $0x30] sm:$0xff]  ;;  %v32_v40 = vld [vmem:[%s874_s2 + $0x38] sm:$0xff] }
   0xb   :  { %85 = vperm.xlu1 %688, %v47_v12   ;;  %v33_v41 = vld [vmem:[%s874_s2 + $0x40] sm:$0xff]  ;;  %v34_v42 = vld [vmem:[%s874_s2 + $0x48] sm:$0xff]  ;;  %v35_v43 = vld [vmem:[%s874_s2 + $0x50] sm:$0xff] }
   0xc   :  { %v36_v44 = vld [vmem:[%s874_s2 + $0x58] sm:$0xff]  ;;  %v37_v45 = vld [vmem:[%s874_s2 + $0x60] sm:$0xff]  ;;  %v38_v46 = vld [vmem:[%s874_s2 + $0x68] sm:$0xff] }
   0xd   :  { %80 = vperm.xlu0 %687, %v46_v11   ;;  %v39_v47 = vld [vmem:[%s874_s2 + $0x70] sm:$0xff]  ;;  %v40_v48 = vld [vmem:[%s874_s2 + $0x78] sm:$0xff] }
   0xf   :  { %95 = vperm.xlu1 %688, %v49_v14  }
  0x11   :  { %90 = vperm.xlu0 %687, %v48_v13  }
  0x13   :  { %105 = vperm.xlu1 %688, %v51_v16  }
  0x15   :  { %100 = vperm.xlu0 %687, %v50_v15  }
  0x17   :  { %115 = vperm.xlu1 %688, %v53_v18  }
  0x19   :  { %110 = vperm.xlu0 %687, %v52_v17  }
  0x1b   :  { %125 = vperm.xlu1 %688, %v55_v20  }
  0x1d   :  { %120 = vperm.xlu0 %687, %v54_v19  }
  0x1f   :  { %135 = vperm.xlu1 %688, %v57_v22  }
  0x21   :  { %130 = vperm.xlu0 %687, %v56_v21  }
  0x25   :  { %141 = vperm.xlu0 %687, %v138_v23  }
  0x82   :  { %v71_v51 = vpop.permute.xlu1 %70 }
  0x84   :  { %v61_v52 = vpop.permute.xlu0 %60 }
  0x86   :  { %v76_v53 = vpop.permute.xlu1 %75 }
  0x88   :  { %v66_v54 = vpop.permute.xlu0 %65 }
  0x8a   :  { %v86_v55 = vpop.permute.xlu1 %85 }
  0x8c   :  { %v81_v56 = vpop.permute.xlu0 %80 }
  0x8e   :  { %v96_v62 = vpop.permute.xlu1 %95 }
  0x90   :  { %v91_v1 = vpop.permute.xlu0 %90 }
  0x92   :  { %v106_v11 = vpop.permute.xlu1 %105 }
  0x94   :  { %v101_v14 = vpop.permute.xlu0 %100 }
  0x96   :  { %v116_v23 = vpop.permute.xlu1 %115 }
  0xdb   :  { %v590_v24 = vpop.f32.mrb[0].mxu0 }
  0xdc   :  { %v233_v25 = vmul.f32 %v590_v24, %v590_v24  ;;  %v223_v26 = vpop.f32.mrb[1].mxu0 }
  0xdd   :  { %v232_v27 = vmul.f32 %v223_v26, %v223_v26  ;;  %v111_v26 = vpop.permute.xlu0 %110 }
  0xdf   :  { %v234_v28 = vadd.f32 %v233_v25, %v232_v27 }
  0xe1   :  { %689 = vrsqrt.f32 %v234_v28  ;;  %vm237_vm5 = vcmp.eq.f32.partialorder %v234_v28, inf  ;;  %v240_v31 = vand.u32 2147483648, %v234_v28  ;;  %vm239_vm6 = vcmp.eq.f32.partialorder %v234_v28, 0.0 }
  0xeb   :  { %v690_v29 = vpop.eup %689 }
  0xec   :  { %v236_v30 = vmul.f32 %v690_v29, %v234_v28 }
  0xee   :  { %v238_v32 = vsel %vm237_vm5, %v234_v28, %v236_v30 }
  0xef   :  { %v241_v33 = vsel %vm239_vm6, %v240_v31, %v238_v32 }
  0xf0   :  { %591 = vmatprep.subr.mxu1 %v241_v33 }
  0xf1   :  { %592 = vmatpush3.msra.mxu1 %v241_v33 }
  0xf2   :  { %594 = vmatmul.mubr.msk.f32.vlgmr.msra.gmra.mrb[0].mxu1 %vm242_vm4, %v26_v34  ;;  %658 = vmatprep.subr.bf16.mxu1 %v693_v49 }
  0xf3   :  { %596 = vmatprep.mubr.msk.f32.mxu1 %vm242_vm4, %v27_v35 }
  0xf6   :  { %597 = vmatmul.mubr.msk.f32.gmra.mrb[2].mxu1 %vm242_vm4, %v28_v36  ;;  %v126_v36 = vpop.permute.xlu1 %125 }
  0xf7   :  { %599 = vmatprep.mubr.msk.f32.mxu1 %vm242_vm4, %v29_v37 }
  0xfa   :  { %600 = vmatmul.mubr.msk.f32.gmra.mrb[4].mxu1 %vm242_vm4, %v30_v38 }
  0xfb   :  { %602 = vmatprep.mubr.msk.f32.mxu1 %vm242_vm4, %v31_v39  ;;  %v121_v39 = vpop.permute.xlu0 %120 }
  0xfe   :  { %603 = vmatmul.mubr.msk.f32.gmra.mrb[6].mxu1 %vm242_vm4, %v32_v40 }
  0xff   :  { %605 = vmatprep.mubr.msk.f32.mxu1 %vm242_vm4, %v33_v41 }
 0x102   :  { %606 = vmatmul.mubr.msk.f32.gmra.mrb[8].mxu1 %vm242_vm4, %v34_v42 }
 0x103   :  { %608 = vmatprep.mubr.msk.f32.mxu1 %vm242_vm4, %v35_v43 }
 0x106   :  { %609 = vmatmul.mubr.msk.f32.gmra.mrb[10].mxu1 %vm242_vm4, %v36_v44 }
 0x107   :  { %611 = vmatprep.mubr.msk.f32.mxu1 %vm242_vm4, %v37_v45 }
 0x10a   :  { %612 = vmatmul.mubr.msk.f32.gmra.mrb[12].mxu1 %vm242_vm4, %v38_v46 }
 0x10b   :  { %614 = vmatprep.mubr.msk.f32.mxu1 %vm242_vm4, %v39_v47 }
 0x10e   :  { %615 = vmatmul.mubr.msk.f32.gmra.mrb[14].mxu1 %vm242_vm4, %v40_v48  ;;  %v136_v48 = vpop.permute.xlu1 %135 }
 0x10f   :  { %649 = vmatprep.mubr.msk.f32.mxu1 %vm694_vm7, %v695_v50 }
 0x1c5   :  { %v595_v57 = vpop.f32.mrb[0].mxu1 }
 0x1c6   :  { %v363_v58 = vadd.f32 %v595_v57, %v66_v54  ;;  %v357_v59 = vpop.f32.mrb[1].mxu1 }
 0x1c7   :  { %v358_v60 = vadd.f32 %v357_v59, %v61_v52  ;;  %v131_v52 = vpop.permute.xlu0 %130 }
 0x1c8   :  { %v437_v61 = vmax.f32 %v363_v58, 0.0 }
 0x1c9   :  { %v436_v63 = vmax.f32 %v358_v60, 0.0  ;;  %v598_v0 = vpop.f32.mrb[2].mxu1  ;;  %v41_v60 = vld [vmem:[%s877_s4] sm:$0xf] }
 0x1ca   :  { %v373_v2 = vadd.f32 %v598_v0, %v76_v53  ;;  %v367_v3 = vpop.f32.mrb[3].mxu1 }
 0x1cb   :  { %v659_v4 = vpack.c.bf16 %v437_v61, %v436_v63  ;;  %v368_v5 = vadd.f32 %v367_v3, %v71_v51  ;;  %v142_v61 = vpop.permute.xlu0 %141 }
 0x1cc   :  { %v439_v6 = vmax.f32 %v373_v2, 0.0 }
 0x1cd   :  { %v438_v7 = vmax.f32 %v368_v5, 0.0  ;;  %v601_v8 = vpop.f32.mrb[4].mxu1  ;;  %660 = vmatpush3.bf16.msra.mxu1 %v659_v4 }
 0x1ce   :  { %v383_v9 = vadd.f32 %v601_v8, %v86_v55  ;;  %v377_v10 = vpop.f32.mrb[5].mxu1  ;;  %661 = vmatprep.subr.bf16.mxu1 %v693_v49 }
 0x1cf   :  { %v662_v12 = vpack.c.bf16 %v439_v6, %v438_v7  ;;  %v378_v13 = vadd.f32 %v377_v10, %v81_v56 }
 0x1d0   :  { %v441_v15 = vmax.f32 %v383_v9, 0.0 }
 0x1d1   :  { %v440_v16 = vmax.f32 %v378_v13, 0.0  ;;  %v604_v17 = vpop.f32.mrb[6].mxu1  ;;  %663 = vmatpush3.bf16.msra.mxu1 %v662_v12 }
 0x1d2   :  { %v393_v18 = vadd.f32 %v604_v17, %v96_v62  ;;  %v387_v19 = vpop.f32.mrb[7].mxu1  ;;  %664 = vmatprep.subr.bf16.mxu1 %v693_v49 }
 0x1d3   :  { %v665_v20 = vpack.c.bf16 %v441_v15, %v440_v16  ;;  %v388_v21 = vadd.f32 %v387_v19, %v91_v1 }
 0x1d4   :  { %v443_v22 = vmax.f32 %v393_v18, 0.0 }
 0x1d5   :  { %v442_v24 = vmax.f32 %v388_v21, 0.0  ;;  %v607_v25 = vpop.f32.mrb[8].mxu1  ;;  %666 = vmatpush3.bf16.msra.mxu1 %v665_v20 }
 0x1d6   :  { %v403_v27 = vadd.f32 %v607_v25, %v106_v11  ;;  %v397_v28 = vpop.f32.mrb[9].mxu1  ;;  %667 = vmatprep.subr.bf16.mxu1 %v693_v49 }
 0x1d7   :  { %v668_v29 = vpack.c.bf16 %v443_v22, %v442_v24  ;;  %v398_v30 = vadd.f32 %v397_v28, %v101_v14 }
 0x1d8   :  { %v445_v31 = vmax.f32 %v403_v27, 0.0 }
 0x1d9   :  { %v444_v32 = vmax.f32 %v398_v30, 0.0  ;;  %v610_v33 = vpop.f32.mrb[10].mxu1  ;;  %669 = vmatpush3.bf16.msra.mxu1 %v668_v29 }
 0x1da   :  { %v413_v34 = vadd.f32 %v610_v33, %v116_v23  ;;  %v407_v35 = vpop.f32.mrb[11].mxu1  ;;  %670 = vmatprep.subr.bf16.mxu1 %v693_v49 }
 0x1db   :  { %v671_v37 = vpack.c.bf16 %v445_v31, %v444_v32  ;;  %v408_v38 = vadd.f32 %v407_v35, %v111_v26 }
 0x1dc   :  { %v447_v40 = vmax.f32 %v413_v34, 0.0 }
 0x1dd   :  { %v446_v41 = vmax.f32 %v408_v38, 0.0  ;;  %v613_v42 = vpop.f32.mrb[12].mxu1  ;;  %672 = vmatpush3.bf16.msra.mxu1 %v671_v37 }
 0x1de   :  { %v423_v43 = vadd.f32 %v613_v42, %v126_v36  ;;  %v417_v44 = vpop.f32.mrb[13].mxu1  ;;  %673 = vmatprep.subr.bf16.mxu1 %v693_v49 }
 0x1df   :  { %v674_v45 = vpack.c.bf16 %v447_v40, %v446_v41  ;;  %v418_v46 = vadd.f32 %v417_v44, %v121_v39 }
 0x1e0   :  { %v449_v47 = vmax.f32 %v423_v43, 0.0 }
 0x1e1   :  { %v448_v50 = vmax.f32 %v418_v46, 0.0  ;;  %v616_v51 = vpop.f32.mrb[14].mxu1  ;;  %675 = vmatpush3.bf16.msra.mxu1 %v674_v45 }
 0x1e2   :  { %v433_v53 = vadd.f32 %v616_v51, %v136_v48  ;;  %v427_v54 = vpop.f32.mrb[15].mxu1  ;;  %676 = vmatprep.subr.bf16.mxu1 %v693_v49 }
 0x1e3   :  { %v677_v55 = vpack.c.bf16 %v449_v47, %v448_v50  ;;  %v428_v56 = vadd.f32 %v427_v54, %v131_v52 }
 0x1e4   :  { %v451_v57 = vmax.f32 %v433_v53, 0.0 }
 0x1e5   :  { %v450_v58 = vmax.f32 %v428_v56, 0.0  ;;  %678 = vmatpush3.bf16.msra.mxu1 %v677_v55 }
 0x1e6   :  { %679 = vmatprep.subr.bf16.mxu1 %v693_v49 }
 0x1e7   :  { %v680_v59 = vpack.c.bf16 %v451_v57, %v450_v58 }
 0x1e9   :  { %681 = vmatpush3.bf16.msra.mxu1 %v680_v59 }
 0x1ec   :  { %650 = vmatmul.mubr.f32.vlgmr.msra.gmra.mrb[16].mxu1 %v41_v60 }
 0x2bf   :  { %v518_v62 = vpop.f32.mrb[16].mxu1 }
 0x2c0   :  { %v519_v63 = vadd.f32 %v518_v62, %v142_v61  ;;  %v651_v0 = vpop.f32.mrb[17].mxu1 }
 0x2c2   :  { %522 = vst [vmem:[%s878_s6] sm:$0xf] %v519_v63 }

</bundles_post_ra>
